<compile_context>
chip_gen: v6e
topology: v6e:2x2x1
jax: 0.10.0
libtpu: 0.0.40
codegen_flags: <defaults>
</compile_context>

<pallas_src>
import jax
import jax.numpy as jnp
from jax.experimental import pallas as pl
from jax.experimental.pallas import tpu as pltpu

_LANE = 128
_MAX_TILE_ROWS = 2048              # (2048, 128) f32 tile = 1 MiB per buffer
_PALLAS_MIN_ELEMS = 256 * 1024     # below this, XLA's fused scalar mul wins


def _round_up(a, b):
    return -(-a // b) * b


def _scale_kernel(w_ref, x_ref, o_ref):
    # w_ref: SMEM (1,) float32 scalar weight; x_ref / o_ref: VMEM (T, 128).
    # Linear(1, 1, bias=False) == broadcast scalar multiply (VPU, not MXU).
    o_ref[...] = x_ref[...] * w_ref[0].astype(x_ref.dtype)


def _pallas_scale(x, w_flat_f32):
    """y = x * w[0, 0] via a lane-dense, tiled, pipelined Pallas kernel."""
    orig_shape = x.shape
    n = x.size

    # Lane-dense view: (rows, 128) with rows = ceil(n / 128). Only pad to a
    # 128 multiple; any remaining raggedness vs. tile_rows is handled by
    # Pallas masking the partial last block.
    rows = -(-n // _LANE)
    n_pad = rows * _LANE

    # Tile sizing: <= _MAX_TILE_ROWS, multiple of 8, and at least 2 grid
    # steps when there is enough work (lets v7x use both TensorCores).
    half_rows = _round_up(max(-(-rows // 2), 1), 8)
    tile_rows = min(_MAX_TILE_ROWS, half_rows, _round_up(rows, 8))
    tile_rows = max(tile_rows, 8)

    xf = jnp.ravel(x)
    if n_pad != n:
        xf = jnp.pad(xf, (0, n_pad - n))
    x2 = xf.reshape(rows, _LANE)

    grid = (pl.cdiv(rows, tile_rows),)

    y2 = pl.pallas_call(
        _scale_kernel,
        out_shape=jax.ShapeDtypeStruct((rows, _LANE), x.dtype),
        grid=grid,
        in_specs=[
            # Scalar weight in SMEM: no VMEM tile, no input DMA pipeline.
            pl.BlockSpec(memory_space=pltpu.MemorySpace.SMEM),
            # Lane-dense batch tiles, auto double-buffered.
            pl.BlockSpec((tile_rows, _LANE), lambda i: (i, 0)),
        ],
        out_specs=pl.BlockSpec((tile_rows, _LANE), lambda i: (i, 0)),
        compiler_params=pltpu.CompilerParams(
            # Independent batch tiles -> shard across v7x's 2 TensorCores.
            dimension_semantics=("parallel",),
            vmem_limit_bytes=32 * 1024 * 1024,
        ),
    )(w_flat_f32, x2)

    # Strip the lane padding (if any) and restore the original (B, 1) shape.
    if n_pad != n:
        return y2.reshape(-1)[:n].reshape(orig_shape)
    return y2.reshape(orig_shape)


def controller_forward(x, w, use_pallas=None):
    """Forward pass of Controller.

    Args:
      x: (B, 1) float input.
      w: (1, 1) float32 weight of nn.Linear(1, 1, bias=False), (out, in) layout.
      use_pallas: None -> auto (size + alignment heuristic); True/False to force.

    Returns:
      (B, 1) output, y = x @ w.T
    """
    assert x.ndim == 2 and x.shape[-1] == 1 and w.shape == (1, 1)
    if use_pallas is None:
        # Only take the Pallas path when the batch is large enough to amortize
        # launch/step overhead AND 128-aligned (zero-copy lane-dense reshape,
        # no pad / un-pad HBM passes). Otherwise XLA's fused scalar multiply
        # already runs at the HBM roofline.
        use_pallas = (x.size >= _PALLAS_MIN_ELEMS) and (x.size % _LANE == 0)
    if not use_pallas:
        return x * w[0, 0].astype(x.dtype)
    # Weight stays float32 in SMEM; cast happens inside the kernel.
    return _pallas_scale(x, jnp.reshape(w, (1,)).astype(jnp.float32))


if __name__ == "__main__":
    key = jax.random.PRNGKey(0)
    k_w, k_x1, k_x2, k_x3 = jax.random.split(key, 4)

    # Deterministic synthetic weight for nn.Linear(1, 1, bias=False): (out, in).
    w = jax.random.uniform(k_w, (1, 1), dtype=jnp.float32, minval=-1.0, maxval=1.0)

    # 1) Small batch (module-scale): auto dispatch takes the fused plain-JAX path.
    x_small = jax.random.normal(k_x1, (8, 1), dtype=jnp.float32)
    y_small = jax.block_until_ready(controller_forward(x_small, w))
    assert y_small.shape == (8, 1)
    assert jnp.allclose(y_small, x_small @ w.T, atol=1e-6, rtol=1e-6)

    # 2) Medium, non-128-aligned batch forced through Pallas: exercises the
    #    pad-to-lane path, a 2-step grid, and a ragged (masked) last block.
    x_med = jax.random.normal(k_x2, (3000, 1), dtype=jnp.float32)
    y_med = jax.block_until_ready(controller_forward(x_med, w, use_pallas=True))
    assert y_med.shape == (3000, 1)
    assert jnp.allclose(y_med, x_med @ w.T, atol=1e-6, rtol=1e-6)

    # 3) Large 128-aligned batch: auto dispatch selects Pallas, the reshape is
    #    zero-copy, and the grid has multiple parallel steps.
    x_big = jax.random.normal(k_x3, (256 * 1024, 1), dtype=jnp.float32)
    y_big = jax.block_until_ready(controller_forward(x_big, w))
    assert y_big.shape == (256 * 1024, 1)
    assert jnp.allclose(y_big, x_big @ w.T, atol=1e-6, rtol=1e-6)

    print("KERNEL_OK")
</pallas_src>

<mosaic_0001>
module attributes {stable_mosaic.version = 11 : i64} {
  func.func @_scale_kernel(%arg0: i32, %arg1: memref<1xf32, #tpu.memory_space<smem>>, %arg2: memref<16x128xf32, #tpu.memory_space<vmem>>, %arg3: memref<16x128xf32, #tpu.memory_space<vmem>>) attributes {dimension_semantics = [#tpu.dimension_semantics<parallel>], iteration_bounds = array<i64: 2>, scalar_prefetch = 0 : i64, scratch_operands = 0 : i64, tpu.core_type = #tpu.core_type<tc>, window_params = [{transform_indices = @transform_0, window_bounds = array<i64: 1>}, {transform_indices = @transform_1, window_bounds = array<i64: 16, 128>}, {transform_indices = @transform_2, window_bounds = array<i64: 16, 128>}]} {
    %c0 = arith.constant 0 : index
    %c0_0 = arith.constant 0 : index
    %0 = vector.load %arg2[%c0, %c0_0] : memref<16x128xf32, #tpu.memory_space<vmem>>, vector<16x128xf32>
    %c0_1 = arith.constant 0 : index
    %1 = memref.load %arg1[%c0_1] : memref<1xf32, #tpu.memory_space<smem>>
    %2 = vector.broadcast %1 : f32 to vector<16x128xf32>
    %3 = arith.mulf %0, %2 : vector<16x128xf32>
    %c0_2 = arith.constant 0 : index
    %c0_3 = arith.constant 0 : index
    %4 = vector.load %arg3[%c0_2, %c0_3] : memref<16x128xf32, #tpu.memory_space<vmem>>, vector<16x128xf32>
    tpu.vector_store %arg3[%c0_2, %c0_3], %3 {strides = array<i32>} : memref<16x128xf32, #tpu.memory_space<vmem>>, vector<16x128xf32>,
    return
  }
  func.func @transform_0(%arg0: i32) -> i32 {
    %c0_i32 = arith.constant 0 : i32
    %c0_i32_0 = arith.constant 0 : i32
    return %c0_i32 : i32
  }
  func.func @transform_1(%arg0: i32) -> (i32, i32) {
    %c0_i32 = arith.constant 0 : i32
    %c0_i32_0 = arith.constant 0 : i32
    return %arg0, %c0_i32 : i32, i32
  }
  func.func @transform_2(%arg0: i32) -> (i32, i32) {
    %c0_i32 = arith.constant 0 : i32
    %c0_i32_0 = arith.constant 0 : i32
    return %arg0, %c0_i32 : i32, i32
  }
}

</mosaic_0001>

<bundles_post_ra>
// kernel: tpu_custom_call.1
= control target key start
LH: loop header
LB: loop body
LE: loop exit
PB: predicated region body
PF: predicated region fallthrough
CT: control target
= control target key end

     0   :  { %s631_s0 = inlined_call_operand.<no memory space> [shape: f32[1], index: 0, kind: input, shape index: {}]   ;;  %s632_s1 = inlined_call_operand.hbm [shape: f32[24,128], index: 1, kind: input, shape index: {}]   ;;  %s633_s2 = inlined_call_operand.hbm [shape: f32[24,128], index: 2, kind: output, shape index: {}]  }
   0x1   :  { %7 = sst [smem:[#allocation2]] %s631_s0 }
   0x2   :  { %8 = vsyncpa [#allocation4], 0 }
   0x3   :  { %10 = vsyncpa [#allocation4 + $0x1], 0 }
   0x4   :  { %11 = vsyncpa [#allocation5], 0 }
   0x5   :  { %13 = vsyncpa [#allocation5 + $0x1], 0  ;;  %s463_s11 = smov 0   ;;  %s465_s12 = smov 0  }
   0x6   :  { %s467_s13 = smov 0   ;;  %s469_s14 = smov 0  }
   0x7 LB: > { %s484_s0 = sadd.s32 4294967295, %s437_s14   ;;  %s280_s15 = sadd.s32 4294967294, %s437_s14   ;;  %s437_s14 = sphi %s469_s14, %s643_s14   ;;  %s433_s13 = sphi %s467_s13, %s642_s13   ;;  %s429_s12 = sphi %s465_s12, %s641_s12   ;;  %s425_s11 = sphi %s463_s11, %s640_s11  }
   0x8   : > { %s488_s16 = sadd.s32 1, %s437_s14   ;;  %s47_s17 = sadd.s32 1, %s433_s13 }
   0x9   : > { %s44_s18 = ssub.s32 %s437_s14, %s488_s16  ;;  %p54_p0 = scmp.ne.s32.totalorder %s433_s13, %s429_s12 }
   0xa   : > { %p45_p1 = scmp.eq.s32.totalorder %s44_s18, 0  ;;  %p55_p2 = scmp.eq.s32.totalorder %s437_s14, 0 }
   0xb   : > { %p60_p3 = scmp.ne.s32.totalorder %s429_s12, %s425_s11  ;;  %p61_p4 = scmp.eq.s32.totalorder %s484_s0, 0 }
   0xc   : > { %s500_s19 = scalar_select %p45_p1, %s433_s13, %s47_s17  }
   0xd   : > { %p56_p5 = por %p55_p2, %p54_p0  ;;  %p502_p6 = por %p61_p4, %p60_p3 }
   0xe   : > { %p84_p7 = scmp.eq.s32.totalorder %s484_s0, 1  ;;  %p90_p8 = scmp.eq.s32.totalorder %s280_s15, 1 }
   0xf   : > { %p634_p11 = scmp.ge.s32.totalorder %s437_s14, 2 }
  0x10   : > { %p507_p9 = por %p84_p7, %p54_p0  ;;  %p511_p10 = por %p90_p8, %p60_p3 }
  0x11   : > { %109 = sbr.rel (%p634_p11) target bundleno = 54 (0x36), region = 20 }
  0x12   : > { %s637_s22 = scalar_select %p511_p10, 1, 0 }
  0x16   : > { %112 = sbr.rel (!%p56_p5) target bundleno = 54 (0x36), region = 24  ;;  %s113_s23 = sand.u32 (%p56_p5), 1, %s433_s13  }
  0x17   : > { %s284_s24 = sshll.u32 (%p56_p5), %s437_s14, 1  ;;  %s283_s25 = sshll.u32 (%p56_p5), %s113_s23, 4 }
  0x18   : > { %s119_s26 = ssub.s32 (%p56_p5), 3, %s284_s24  ;;  %s523_s29 = scalar_lea.sflag (%p56_p5), [#allocation4], %s113_s23 }
  0x19   : > { %p120_p12 = scmp.lt.s32.totalorder (%p56_p5), %s119_s26, 2  ;;  %s117_s30 = scalar_lea.vmem (%p56_p5), [#allocation3], %s283_s25 }
  0x1b   : > { %s645_s26 = smov (!%p120_p12, %s119_s26), 2 }
  0x1c   : > { %s520_s27 = sshll.u32 %s645_s26, 7 }
  0x1d   : > { %s124_s28 = ssub.s32 256, %s520_s27 }
  0x1e   : > { %125 = vsyncadd %s523_s29, %s124_s28  ;;  %p286_p13 = scmp.ne.s32.totalorder %s520_s27, 0  ;;  %s302_s3 = sshll.u32 %s437_s14, 8 }
  0x1f   : > { %s531_s6 = scalar_lea.hbm %s632_s1, %s302_s3  ;;  %s130_s7 = sshll.u32 %s117_s30, 4  ;;  %s533_s7 = int_to_ptr.vmem [resolvable:$true] %s130_s7 }
  0x20   : > { %s347_s8 = scalar_lea.hbm %s531_s6, %s520_s27  ;;  %s351_s15 = scalar_lea.hbm %s632_s1, 384 }
  0x21   : > { %p348_p0 = scmp.ne.s32.totalorder %s531_s6, %s347_s8  ;;  %p352_p3 = scmp.lt.s32.totalorder %s531_s6, %s632_s1 }
  0x22   : > { %p353_p4 = scmp.lt.s32.totalorder %s351_s15, %s347_s8 }
  0x23   : > { %p349_p1 = pnand %p348_p0, %p286_p13 }
  0x24   : > { %p354_p5 = por %p353_p4, %p352_p3 }
  0x25   : > { %p350_p2 = pneg %p349_p1 }
  0x27   : > { %p355_p7 = pnand %p354_p5, %p350_p2 }
  0x29   : > { %358 = shalt.err (!%p355_p7)
}
  0x2a   : > { %s359_s23 = scalar_lea.vmem %s533_s7, %s520_s27  ;;  %s439_s24 = smov [#allocation3]  }
  0x2b   : > { %p360_p8 = scmp.ne.s32.totalorder %s533_s7, %s359_s23  ;;  %s363_s25 = sshll.u32 %s439_s24, 4  ;;  %s364_s25 = int_to_ptr.vmem [resolvable:$false] %s363_s25 }
  0x2c   : > { %s365_s26 = scalar_lea.vmem %s364_s25, 512  ;;  %p366_p1 = scmp.lt.s32.totalorder %s533_s7, %s364_s25 }
  0x2d   : > { %p361_p12 = pnand %p360_p8, %p286_p13  ;;  %p367_p11 = scmp.lt.s32.totalorder %s365_s26, %s359_s23 }
  0x2f   : > { %p362_p0 = pneg %p361_p12  ;;  %p368_p10 = por %p367_p11, %p366_p1 }
  0x31   : > { %p369_p3 = pnand %p368_p10, %p362_p0 }
  0x33   : > { %372 = shalt.err (!%p369_p3)
}
  0x34   : > { %s440_s28 = smov 128   ;;  %s441_s30 = smov 8  }
  0x35   : > { %136 = dma.hbm_to_vmem [thread:$0]  (%p286_p13), %s531_s6, %s520_s27, %s533_s7, %s523_s29, %s440_s28, %s440_s28, %s441_s30  }
  0x36 PF: > { %p290_p2 = scmp.ge.s32.totalorder %s437_s14, 1  ;;  %p138_p4 = scmp.lt.s32.totalorder %s437_s14, 3 }
  0x38   : > { %p139_p5 = pnand %p290_p2, %p138_p4 }
  0x39   : > { %s562_s3 = sand.u32 (!%p139_p5), 1, %s429_s12  }
  0x3a   : > { %142 = sbr.rel (%p139_p5) target bundleno = 101 (0x65), region = 28  ;;  %s291_s4 = sshll.u32 (!%p139_p5), %s562_s3, 4 }
  0x3b   : > { %s145_s5 = scalar_lea.sflag (!%p139_p5), [#allocation4], %s562_s3  ;;  %s148_s8 = scalar_lea.vmem (!%p139_p5), [#allocation3], %s291_s4 }
  0x3f   : > { %416 = dma.done.wait (%p502_p6), %s145_s5, 256  }
  0x40   : > { %418 = vsyncadd (%p502_p6), %s145_s5, 4294967040  ;;  %s181_s27 = sld [smem:[#allocation2]]  ;;  %v179_v0 = vld [vmem:[%s148_s8] sm:$0xff]  ;;  %v180_v2 = vld [vmem:[%s148_s8 + $0x8] sm:$0xff]  ;;  %s168_s29 = scalar_lea.vmem [#allocation6], %s291_s4 }
  0x41   : > { %s188_s6 = scalar_lea.sflag [#allocation5], %s562_s3  ;;  %s294_s7 = sshll.u32 (%p507_p9), %s484_s0, 1 }
  0x42   : > { %s196_s9 = ssub.s32 (%p507_p9), 3, %s294_s7 }
  0x43   : > { %p197_p10 = scmp.lt.s32.totalorder (%p507_p9), %s196_s9, 2 }
  0x45   : > { %194 = sbr.rel (!%p507_p9) target bundleno = 101 (0x65), region = 36 }
  0x46   : > { %v182_v1 = vstv %s181_s27 }
  0x47   : > { %v183_v3 = vmul.f32 %v182_v1, %v179_v0  ;;  %v184_v4 = vmul.f32 %v182_v1, %v180_v2 }
  0x49   : > { %185 = vst [vmem:[%s168_s29] sm:$0xff] %v183_v3  ;;  %186 = vst [vmem:[%s168_s29 + $0x8] sm:$0xff] %v184_v4 }
  0x4a   : > { %s647_s9 = smov (!%p197_p10, %s196_s9), 2 }
  0x4b   : > { %s574_s20 = sshll.u32 %s647_s9, 7 }
  0x4c   : > { %s201_s10 = ssub.s32 256, %s574_s20 }
  0x4d   : > { %202 = vsyncadd %s188_s6, %s201_s10  ;;  %p296_p6 = scmp.ne.s32.totalorder %s574_s20, 0  ;;  %s303_s15 = sshll.u32 %s484_s0, 8 }
  0x4e   : > { %s584_s18 = scalar_lea.hbm %s633_s2, %s303_s15  ;;  %s207_s23 = sshll.u32 %s168_s29, 4  ;;  %s586_s23 = int_to_ptr.vmem [resolvable:$true] %s207_s23 }
  0x4f   : > { %s373_s24 = scalar_lea.vmem %s586_s23, %s574_s20  ;;  %s442_s25 = smov [#allocation6]  }
  0x50   : > { %p374_p9 = scmp.ne.s32.totalorder %s586_s23, %s373_s24  ;;  %s377_s26 = sshll.u32 %s442_s25, 4  ;;  %s378_s26 = int_to_ptr.vmem [resolvable:$false] %s377_s26 }
  0x51   : > { %s379_s0 = scalar_lea.vmem %s378_s26, 512  ;;  %p380_p7 = scmp.lt.s32.totalorder %s586_s23, %s378_s26 }
  0x52   : > { %p375_p11 = pnand %p374_p9, %p296_p6  ;;  %p381_p8 = scmp.lt.s32.totalorder %s379_s0, %s373_s24 }
  0x54   : > { %p376_p13 = pneg %p375_p11  ;;  %p382_p12 = por %p381_p8, %p380_p7 }
  0x56   : > { %p383_p0 = pnand %p382_p12, %p376_p13 }
  0x58   : > { %386 = shalt.err (!%p383_p0)
}
  0x59   : > { %s387_s28 = scalar_lea.hbm %s584_s18, %s574_s20  ;;  %s391_s5 = scalar_lea.hbm %s633_s2, 384 }
  0x5a   : > { %p388_p1 = scmp.ne.s32.totalorder %s584_s18, %s387_s28  ;;  %p392_p4 = scmp.lt.s32.totalorder %s584_s18, %s633_s2 }
  0x5b   : > { %p393_p5 = scmp.lt.s32.totalorder %s391_s5, %s387_s28 }
  0x5c   : > { %p389_p3 = pnand %p388_p1, %p296_p6 }
  0x5d   : > { %p394_p10 = por %p393_p5, %p392_p4 }
  0x5e   : > { %p390_p2 = pneg %p389_p3 }
  0x60   : > { %p395_p9 = pnand %p394_p10, %p390_p2 }
  0x62   : > { %398 = shalt.err (!%p395_p9)
}
  0x63   : > { %s443_s29 = smov 128   ;;  %s444_s7 = smov 8  }
  0x64   : > { %213 = dma.vmem_to_hbm [thread:$0]  (%p296_p6), %s586_s23, %s574_s20, %s584_s18, %s188_s6, %s443_s29, %s443_s29, %s444_s7  }
  0x65 PF: > { %s222_s9 = sand.u32 1, %s425_s11   ;;  %p638_p11 = scmp.ne.s32.totalorder %s637_s22, 0 }
  0x66   : > { %p639_p13 = scmp.ge.s32.totalorder %s437_s14, 2  ;;  %s223_s10 = scalar_lea.sflag [#allocation5], %s222_s9 }
  0x68   : > { %p307_p7 = pnand %p639_p13, %p638_p11 }
  0x6a   : > { %p308_p8 = pneg %p307_p7 }
  0x6c   : > { %420 = dma.done.wait (%p308_p8), %s223_s10, 256  }
  0x6d   : > { %422 = vsyncadd (%p308_p8), %s223_s10, 4294967040  ;;  %p16_p12 = scmp.ge.s32.totalorder %s488_s16, 4   ;;  %s640_s11 = smov %s429_s12 }
  0x6e   : > { %s641_s12 = smov %s433_s13  ;;  %s642_s13 = smov %s500_s19 }
  0x6f   : > { %s643_s14 = smov %s488_s16  ;;  %18 = sbr.rel (!%p16_p12) target bundleno = 7 (0x7), region = 73 }
  0x74   :  { %228 = vsyncpa [#allocation4], 1 }
  0x75   :  { %230 = vsyncpa [#allocation4 + $0x1], 1 }
  0x76   :  { %231 = vsyncpa [#allocation5], 1 }
  0x77   :  { %233 = vsyncpa [#allocation5 + $0x1], 1 }

</bundles_post_ra>
